<compile_context>
chip_gen: v7x
topology: tpu7x:2x2x1
jax: 0.10.0
libtpu: 0.0.40
codegen_flags: <defaults>
</compile_context>

<pallas_src>
import functools
import math

import jax
import jax.numpy as jnp
from jax import lax
from jax.experimental import pallas as pl
from jax.experimental.pallas import tpu as pltpu

IN_DIM, H1_DIM, H2_DIM, OUT_DIM = 4, 24, 48, 2


def _ceil_to(n: int, m: int) -> int:
    return -(-n // m) * m


def dqn_kernel(x_ref, w1_ref, b1_ref, w2_ref, b2_ref, w3_ref, b3_ref, o_ref):
    """One (tile_b, 4) slab of states -> one (2, tile_b) slab of Q-values.

    The batch lives in the lane dimension throughout ("transposed" network),
    so all intermediates and the output store are lane-dense.  Weights/biases
    are the same full-extent, VMEM-resident blocks at every grid step.
    """
    cd = w1_ref.dtype                      # matmul-operand dtype (f32 or bf16)
    x = x_ref[...].astype(cd)              # (tile_b, 4)

    # Layer 1: (24, 4) x (tile_b, 4), contracting the 4-wide feature dim of
    # both operands ("NT" dot) -> (24, tile_b) with f32 MXU accumulation.
    h1 = lax.dot_general(w1_ref[...], x, (((1,), (1,)), ((), ())),
                         preferred_element_type=jnp.float32)
    h1 = jnp.maximum(h1 + b1_ref[...], 0.0)                     # (24, tile_b)

    # Layer 2: (48, 24) @ (24, tile_b) -> (48, tile_b).
    h2 = jnp.dot(w2_ref[...], h1.astype(cd), preferred_element_type=jnp.float32)
    h2 = jnp.maximum(h2 + b2_ref[...], 0.0)                     # (48, tile_b)

    # Layer 3: (2, 48) @ (48, tile_b) -> (2, tile_b); lane-dense store.
    o = jnp.dot(w3_ref[...], h2.astype(cd), preferred_element_type=jnp.float32)
    o_ref[...] = (o + b3_ref[...]).astype(o_ref.dtype)


@functools.partial(jax.jit, static_argnames=("tile_b",))
def dqn_forward(x, params, *, tile_b=1024):
    """x: (B, 4) f32 states; params: from init_params.  Returns (B, 2) Q-values."""
    w1, b1, w2, b2, w3, b3 = params
    B = x.shape[0]

    # --- batch tiling --------------------------------------------------------
    b_round = _ceil_to(B, 8)               # sublane-aligned row count
    if b_round <= tile_b:
        tile = b_round                     # single full-extent tile (always legal)
        # v7x has 2 TensorCores: give the "parallel" axis >= 2 steps when the
        # batch is big enough to split into two 128-aligned tiles.
        if b_round >= 512 and b_round % 256 == 0:
            tile = b_round // 2
    else:
        n_target = pl.cdiv(b_round, tile_b)
        tile = _ceil_to(pl.cdiv(b_round, n_target), 128)   # lane-aligned tiles
    num_tiles = pl.cdiv(b_round, tile)
    b_pad = num_tiles * tile

    if b_pad != B:
        # Row-only pad (no lane padding); only hit when B isn't tile-aligned.
        x = jnp.pad(x, ((0, b_pad - B), (0, 0)))

    # --- advisory cost hint for the XLA scheduler ----------------------------
    flops = 2 * b_pad * (IN_DIM * H1_DIM + H1_DIM * H2_DIM + H2_DIM * OUT_DIM)
    param_bytes = sum(int(p.size) * p.dtype.itemsize for p in params)
    bytes_accessed = (x.dtype.itemsize * b_pad * IN_DIM
                      + 4 * OUT_DIM * b_pad + param_bytes)

    const = lambda i: (0, 0)               # weights/biases: VMEM-resident blocks

    out_t = pl.pallas_call(
        dqn_kernel,
        out_shape=jax.ShapeDtypeStruct((OUT_DIM, b_pad), jnp.float32),
        grid=(num_tiles,),
        in_specs=[
            pl.BlockSpec((tile, IN_DIM), lambda i: (i, 0)),     # x tile (streamed)
            pl.BlockSpec((H1_DIM, IN_DIM), const),              # W1 (24, 4)
            pl.BlockSpec((H1_DIM, 1), const),                   # b1 (24, 1)
            pl.BlockSpec((H2_DIM, H1_DIM), const),              # W2 (48, 24)
            pl.BlockSpec((H2_DIM, 1), const),                   # b2 (48, 1)
            pl.BlockSpec((OUT_DIM, H2_DIM), const),             # W3 (2, 48)
            pl.BlockSpec((OUT_DIM, 1), const),                  # b3 (2, 1)
        ],
        out_specs=pl.BlockSpec((OUT_DIM, tile), lambda i: (0, i)),
        compiler_params=pltpu.CompilerParams(
            dimension_semantics=("parallel",),   # shard batch tiles across TCs
        ),
        cost_estimate=pl.CostEstimate(
            flops=flops, transcendentals=0, bytes_accessed=bytes_accessed),
    )(x, w1, b1, w2, b2, w3, b3)

    # (2, b_pad) lane-dense slab -> logical (B, 2); tiny wrapper slice/transpose.
    return out_t[:, :B].T


def init_params(key, dtype=jnp.float32):
    """torch.nn.Linear-style init (U[-1/sqrt(fan_in), +1/sqrt(fan_in)]).
    Weights are stored (out, in) exactly like PyTorch; no padding anywhere.
    Biases stay f32; pass dtype=jnp.bfloat16 for bf16 matmul operands."""
    dims = [(IN_DIM, H1_DIM), (H1_DIM, H2_DIM), (H2_DIM, OUT_DIM)]
    params = []
    for i, (fan_in, fan_out) in enumerate(dims):
        kw, kb = jax.random.split(jax.random.fold_in(key, i))
        bound = 1.0 / math.sqrt(fan_in)
        w = jax.random.uniform(kw, (fan_out, fan_in), jnp.float32, -bound, bound)
        b = jax.random.uniform(kb, (fan_out, 1), jnp.float32, -bound, bound)
        params.extend([w.astype(dtype), b])
    return tuple(params)


if __name__ == "__main__":
    key = jax.random.PRNGKey(0)
    k_x, k_p = jax.random.split(key)

    batch = 8  # small demo batch; single full-extent tile
    x = jax.random.normal(k_x, (batch, IN_DIM), dtype=jnp.float32)  # CartPole states
    params = init_params(k_p)

    out = jax.block_until_ready(dqn_forward(x, params))

    # Pure-JAX reference (identical math to the PyTorch DQN forward).
    w1, b1, w2, b2, w3, b3 = params
    ref = jnp.maximum(x @ w1.T + b1[:, 0], 0.0)
    ref = jnp.maximum(ref @ w2.T + b2[:, 0], 0.0)
    ref = ref @ w3.T + b3[:, 0]

    assert out.shape == (batch, OUT_DIM)
    assert jnp.allclose(out, ref, atol=1e-4, rtol=1e-4), (
        float(jnp.max(jnp.abs(out - ref))))

    # Exercise the multi-tile + row-padding path once at a small tile size.
    batch2 = 300
    x2 = jax.random.normal(jax.random.fold_in(k_x, 1), (batch2, IN_DIM),
                           dtype=jnp.float32)
    out2 = jax.block_until_ready(dqn_forward(x2, params, tile_b=128))
    ref2 = jnp.maximum(x2 @ w1.T + b1[:, 0], 0.0)
    ref2 = jnp.maximum(ref2 @ w2.T + b2[:, 0], 0.0)
    ref2 = ref2 @ w3.T + b3[:, 0]
    assert out2.shape == (batch2, OUT_DIM)
    assert jnp.allclose(out2, ref2, atol=1e-4, rtol=1e-4)

    print("KERNEL_OK")
</pallas_src>

<mosaic_0001>
module attributes {stable_mosaic.version = 11 : i64} {
  func.func @dqn_kernel(%arg0: i32, %arg1: memref<8x4xf32, #tpu.memory_space<vmem>>, %arg2: memref<24x4xf32, #tpu.memory_space<vmem>>, %arg3: memref<24x1xf32, #tpu.memory_space<vmem>>, %arg4: memref<48x24xf32, #tpu.memory_space<vmem>>, %arg5: memref<48x1xf32, #tpu.memory_space<vmem>>, %arg6: memref<2x48xf32, #tpu.memory_space<vmem>>, %arg7: memref<2x1xf32, #tpu.memory_space<vmem>>, %arg8: memref<2x8xf32, #tpu.memory_space<vmem>>) attributes {dimension_semantics = [#tpu.dimension_semantics<parallel>], iteration_bounds = array<i64: 1>, scalar_prefetch = 0 : i64, scratch_operands = 0 : i64, tpu.core_type = #tpu.core_type<tc>, window_params = [{transform_indices = @transform_0, window_bounds = array<i64: 8, 4>}, {pipeline_mode = #tpu.pipeline_mode<synchronous>, transform_indices = @transform_1, window_bounds = array<i64: 24, 4>}, {pipeline_mode = #tpu.pipeline_mode<synchronous>, transform_indices = @transform_2, window_bounds = array<i64: 24, 1>}, {pipeline_mode = #tpu.pipeline_mode<synchronous>, transform_indices = @transform_3, window_bounds = array<i64: 48, 24>}, {pipeline_mode = #tpu.pipeline_mode<synchronous>, transform_indices = @transform_4, window_bounds = array<i64: 48, 1>}, {pipeline_mode = #tpu.pipeline_mode<synchronous>, transform_indices = @transform_5, window_bounds = array<i64: 2, 48>}, {pipeline_mode = #tpu.pipeline_mode<synchronous>, transform_indices = @transform_6, window_bounds = array<i64: 2, 1>}, {transform_indices = @transform_7, window_bounds = array<i64: 2, 8>}]} {
    %c0 = arith.constant 0 : index
    %c0_0 = arith.constant 0 : index
    %0 = vector.load %arg1[%c0, %c0_0] : memref<8x4xf32, #tpu.memory_space<vmem>>, vector<8x4xf32>
    %c0_1 = arith.constant 0 : index
    %c0_2 = arith.constant 0 : index
    %1 = vector.load %arg2[%c0_1, %c0_2] : memref<24x4xf32, #tpu.memory_space<vmem>>, vector<24x4xf32>
    %cst = arith.constant dense<0.000000e+00> : vector<24x8xf32>
    %2 = tpu.matmul %1, %0, %cst {dimension_numbers = #tpu.dot_dimension_numbers<[1], [1], [0], [0], [0, 0, 1, 0], [], []>} : vector<24x4xf32>, vector<8x4xf32>, vector<24x8xf32> -> vector<24x8xf32>
    %c0_3 = arith.constant 0 : index
    %c0_4 = arith.constant 0 : index
    %3 = vector.load %arg3[%c0_3, %c0_4] : memref<24x1xf32, #tpu.memory_space<vmem>>, vector<24x1xf32>
    %4 = vector.broadcast %3 : vector<24x1xf32> to vector<24x8xf32>
    %5 = arith.addf %2, %4 : vector<24x8xf32>
    %cst_5 = arith.constant 0.000000e+00 : f32
    %6 = vector.broadcast %cst_5 : f32 to vector<24x8xf32>
    %7 = arith.maximumf %5, %6 : vector<24x8xf32>
    %c0_6 = arith.constant 0 : index
    %c0_7 = arith.constant 0 : index
    %8 = vector.load %arg4[%c0_6, %c0_7] : memref<48x24xf32, #tpu.memory_space<vmem>>, vector<48x24xf32>
    %cst_8 = arith.constant dense<0.000000e+00> : vector<48x8xf32>
    %9 = tpu.matmul %8, %7, %cst_8 {dimension_numbers = #tpu.dot_dimension_numbers<[1], [0], [0], [1], [0, 0, 1, 1], [], []>} : vector<48x24xf32>, vector<24x8xf32>, vector<48x8xf32> -> vector<48x8xf32>
    %c0_9 = arith.constant 0 : index
    %c0_10 = arith.constant 0 : index
    %10 = vector.load %arg5[%c0_9, %c0_10] : memref<48x1xf32, #tpu.memory_space<vmem>>, vector<48x1xf32>
    %11 = vector.broadcast %10 : vector<48x1xf32> to vector<48x8xf32>
    %12 = arith.addf %9, %11 : vector<48x8xf32>
    %cst_11 = arith.constant 0.000000e+00 : f32
    %13 = vector.broadcast %cst_11 : f32 to vector<48x8xf32>
    %14 = arith.maximumf %12, %13 : vector<48x8xf32>
    %c0_12 = arith.constant 0 : index
    %c0_13 = arith.constant 0 : index
    %15 = vector.load %arg6[%c0_12, %c0_13] : memref<2x48xf32, #tpu.memory_space<vmem>>, vector<2x48xf32>
    %cst_14 = arith.constant dense<0.000000e+00> : vector<2x8xf32>
    %16 = tpu.matmul %15, %14, %cst_14 {dimension_numbers = #tpu.dot_dimension_numbers<[1], [0], [0], [1], [0, 0, 1, 1], [], []>} : vector<2x48xf32>, vector<48x8xf32>, vector<2x8xf32> -> vector<2x8xf32>
    %c0_15 = arith.constant 0 : index
    %c0_16 = arith.constant 0 : index
    %17 = vector.load %arg7[%c0_15, %c0_16] : memref<2x1xf32, #tpu.memory_space<vmem>>, vector<2x1xf32>
    %18 = vector.broadcast %17 : vector<2x1xf32> to vector<2x8xf32>
    %19 = arith.addf %16, %18 : vector<2x8xf32>
    %c0_17 = arith.constant 0 : index
    %c0_18 = arith.constant 0 : index
    %20 = vector.load %arg8[%c0_17, %c0_18] : memref<2x8xf32, #tpu.memory_space<vmem>>, vector<2x8xf32>
    tpu.vector_store %arg8[%c0_17, %c0_18], %19 {strides = array<i32>} : memref<2x8xf32, #tpu.memory_space<vmem>>, vector<2x8xf32>,
    return
  }
  func.func @transform_0(%arg0: i32) -> (i32, i32) {
    %c0_i32 = arith.constant 0 : i32
    %c0_i32_0 = arith.constant 0 : i32
    return %arg0, %c0_i32 : i32, i32
  }
  func.func @transform_1(%arg0: i32) -> (i32, i32) {
    %c0_i32 = arith.constant 0 : i32
    %c0_i32_0 = arith.constant 0 : i32
    %c0_i32_1 = arith.constant 0 : i32
    return %c0_i32, %c0_i32_0 : i32, i32
  }
  func.func @transform_2(%arg0: i32) -> (i32, i32) {
    %c0_i32 = arith.constant 0 : i32
    %c0_i32_0 = arith.constant 0 : i32
    %c0_i32_1 = arith.constant 0 : i32
    return %c0_i32, %c0_i32_0 : i32, i32
  }
  func.func @transform_3(%arg0: i32) -> (i32, i32) {
    %c0_i32 = arith.constant 0 : i32
    %c0_i32_0 = arith.constant 0 : i32
    %c0_i32_1 = arith.constant 0 : i32
    return %c0_i32, %c0_i32_0 : i32, i32
  }
  func.func @transform_4(%arg0: i32) -> (i32, i32) {
    %c0_i32 = arith.constant 0 : i32
    %c0_i32_0 = arith.constant 0 : i32
    %c0_i32_1 = arith.constant 0 : i32
    return %c0_i32, %c0_i32_0 : i32, i32
  }
  func.func @transform_5(%arg0: i32) -> (i32, i32) {
    %c0_i32 = arith.constant 0 : i32
    %c0_i32_0 = arith.constant 0 : i32
    %c0_i32_1 = arith.constant 0 : i32
    return %c0_i32, %c0_i32_0 : i32, i32
  }
  func.func @transform_6(%arg0: i32) -> (i32, i32) {
    %c0_i32 = arith.constant 0 : i32
    %c0_i32_0 = arith.constant 0 : i32
    %c0_i32_1 = arith.constant 0 : i32
    return %c0_i32, %c0_i32_0 : i32, i32
  }
  func.func @transform_7(%arg0: i32) -> (i32, i32) {
    %c0_i32 = arith.constant 0 : i32
    %c0_i32_0 = arith.constant 0 : i32
    return %c0_i32, %arg0 : i32, i32
  }
}

</mosaic_0001>

<bundles_post_ra>
// kernel: dqn_forward.1
= control target key start
LH: loop header
LB: loop body
LE: loop exit
PB: predicated region body
PF: predicated region fallthrough
CT: control target
= control target key end

     0   :  { %vm49_vm0 = vcmask 31744   ;;  %v520_v1 = vmov 0.0   ;;  %vm521_vm1 = vmmov 0   ;;  %v522_v4 = vmov 0   ;;  %s654_s0 = inlined_call_operand.vmem [shape: f32[8,4], index: 0, kind: input, shape index: {}]   ;;  %s655_s1 = inlined_call_operand.vmem [shape: f32[24,4], index: 1, kind: input, shape index: {}]   ;;  %s656_s2 = inlined_call_operand.vmem [shape: f32[24,1], index: 2, kind: input, shape index: {}]   ;;  %s657_s3 = inlined_call_operand.vmem [shape: f32[48,24], index: 3, kind: input, shape index: {}]   ;;  %s658_s4 = inlined_call_operand.vmem [shape: f32[48,1], index: 4, kind: input, shape index: {}]   ;;  %s659_s5 = inlined_call_operand.vmem [shape: f32[2,48], index: 5, kind: input, shape index: {}]   ;;  %s660_s6 = inlined_call_operand.vmem [shape: f32[2,1], index: 6, kind: input, shape index: {}]   ;;  %s661_s7 = inlined_call_operand.hbm [shape: f32[2,8], index: 7, kind: output, shape index: {}]  }
   0x1   :  { %v27_v0 = vld [vmem:[%s654_s0] sm:$0xff]  ;;  %435 = vmatprep.subr.mxu0 %v520_v1  ;;  %437 = vmatprep.mubr.msk.f32.mxu0 %vm521_vm1, %v520_v1  ;;  %v33_v5 = vld [vmem:[%s656_s2 + $0x10] sm:$0xff]  ;;  %v32_v6 = vld [vmem:[%s656_s2 + $0x8] sm:$0xff] }
   0x2   :  { %v31_v2 = vld [vmem:[%s656_s2] sm:$0xff]  ;;  %436 = vmatpush3.xpose.msk.msra.mxu0 %vm49_vm0, %v27_v0  ;;  %494 = vset.pattern.permute.xlu0 %v522_v4 }
   0x3   :  { %v28_v3 = vld [vmem:[%s655_s1] sm:$0xff]  ;;  %36 = vperm.xlu0 %494, %v31_v2   ;;  %495 = vset.pattern.permute.xlu1 %v522_v4 }
   0x4   :  { %46 = vperm.xlu1 %495, %v33_v5  }
   0x5   :  { %12 = vsyncpa [#allocation3], 0  ;;  %438 = vmatmul.mubr.msk.f32.vlgmr.msra.gmra.mrb[0].mxu0 %vm49_vm0, %v28_v3  ;;  %v151_v7 = vld [vmem:[%s658_s4] sm:$0xff]  ;;  %v29_v8 = vld [vmem:[%s655_s1 + $0x8] sm:$0xff]  ;;  %vm187_vm2 = vcmask 195584   ;;  %v523_v38 = vmov 0.0|0.0  }
   0x6   :  { %440 = vmatprep.mubr.msk.f32.mxu0 %vm521_vm1, %v520_v1  ;;  %v152_v9 = vld [vmem:[%s658_s4 + $0x8] sm:$0xff]  ;;  %v153_v10 = vld [vmem:[%s658_s4 + $0x10] sm:$0xff]  ;;  %v154_v12 = vld [vmem:[%s658_s4 + $0x18] sm:$0xff]  ;;  %480 = vmatprep.subr.bf16.mxu0 %v523_v38  ;;  %vm314_vm3 = vcmask 392192   ;;  %s524_s13 = smov [#allocation2]   ;;  %vm388_vm4 = vcmask 58368  }
   0x7   :  { %41 = vperm.xlu0 %494, %v32_v6   ;;  %v30_v11 = vld [vmem:[%s655_s1 + $0x10] sm:$0xff]  ;;  %v155_v13 = vld [vmem:[%s658_s4 + $0x20] sm:$0xff]  ;;  %v156_v14 = vld [vmem:[%s658_s4 + $0x28] sm:$0xff]  ;;  %s396_s14 = sshll.u32 %s524_s13, 4  ;;  %s397_s14 = int_to_ptr.vmem [resolvable:$true] %s396_s14 }
   0x8   :  { %159 = vperm.xlu1 %495, %v151_v7   ;;  %v308_v15 = vld [vmem:[%s660_s6] sm:$0x3]  ;;  %v146_v33 = vld [vmem:[%s657_s3 + $0x8] sm:$0xff]  ;;  %v147_v34 = vld [vmem:[%s657_s3 + $0x10] sm:$0xff]  ;;  %s496_s15 = scalar_lea.vmem %s397_s14, 32  ;;  %p501_p1 = scmp.lt.s32.totalorder %s397_s14, %s397_s14 }
   0x9   :  { %441 = vmatmul.mubr.msk.f32.gmra.mrb[2].mxu0 %vm49_vm0, %v29_v8  ;;  %v145_v16 = vld [vmem:[%s657_s3] sm:$0xff]  ;;  %v148_v35 = vld [vmem:[%s657_s3 + $0x18] sm:$0xff]  ;;  %v150_v37 = vld [vmem:[%s657_s3 + $0x28] sm:$0xff]  ;;  %p497_p0 = scmp.ne.s32.totalorder %s397_s14, %s496_s15  ;;  %p502_p2 = scmp.lt.s32.totalorder %s496_s15, %s496_s15 }
   0xa   :  { %443 = vmatprep.mubr.msk.f32.mxu0 %vm521_vm1, %v520_v1  ;;  %452 = vmatprep.mubr.msk.f32.mxu1 %vm187_vm2, %v145_v16  ;;  %v149_v36 = vld [vmem:[%s657_s3 + $0x20] sm:$0xff] }
   0xb   :  { %164 = vperm.xlu0 %494, %v152_v9   ;;  %v307_v2 = vld [vmem:[%s659_s5] sm:$0x3]  ;;  %p503_p3 = por %p502_p2, %p501_p1 }
   0xc   :  { %169 = vperm.xlu1 %495, %v153_v10  }
   0xd   :  { %444 = vmatmul.mubr.msk.f32.gmra.mrb[4].mxu0 %vm49_vm0, %v30_v11  ;;  %p504_p4 = pnand %p503_p3, %p497_p0 }
   0xe   :  { %473 = vmatprep.mubr.msk.f32.mxu0 %vm521_vm1, %v520_v1 }
   0xf   :  { %174 = vperm.xlu0 %494, %v154_v12  }
  0x10   :  { %179 = vperm.xlu1 %495, %v155_v13  }
  0x13   :  { %184 = vperm.xlu0 %494, %v156_v14  }
  0x14   :  { %311 = vperm.xlu1 %495, %v308_v15  }
  0x82   :  { %v37_v17 = vpop.permute.xlu0 %36 }
  0x83   :  { %v47_v27 = vpop.permute.xlu1 %46 }
  0x86   :  { %v42_v21 = vpop.permute.xlu0 %41 }
  0x87   :  { %v160_v40 = vpop.permute.xlu1 %159 }
  0x8a   :  { %v165_v39 = vpop.permute.xlu0 %164 }
  0x8b   :  { %v170_v46 = vpop.permute.xlu1 %169 }
  0x8e   :  { %v175_v44 = vpop.permute.xlu0 %174 }
  0x8f   :  { %v180_v58 = vpop.permute.xlu1 %179 }
  0x92   :  { %v185_v55 = vpop.permute.xlu0 %184 }
  0x93   :  { %v312_v3 = vpop.permute.xlu1 %311 }
  0xd8   :  { %v128_v18 = vpop.f32.mrb[0].mxu0 }
  0xd9   :  { %v439_v19 = vpop.f32.mrb[1].mxu0  ;;  %v129_v20 = vadd.f32 %v128_v18, %v37_v17 }
  0xdb   :  { %v142_v25 = vmax.f32 %v129_v20, 0.0 }
  0xdc   :  { %v133_v22 = vpop.f32.mrb[2].mxu0 }
  0xdd   :  { %v134_v23 = vadd.f32 %v133_v22, %v42_v21  ;;  %v442_v24 = vpop.f32.mrb[3].mxu0 }
  0xdf   :  { %v143_v26 = vmax.f32 %v134_v23, 0.0 }
  0xe0   :  { %v138_v28 = vpop.f32.mrb[4].mxu0 }
  0xe1   :  { %v139_v29 = vadd.f32 %v138_v28, %v47_v27  ;;  %v445_v30 = vpop.f32.mrb[5].mxu0  ;;  %v476_v31 = vpack.c.bf16 %v143_v26, %v142_v25 }
  0xe3   :  { %v144_v32 = vmax.f32 %v139_v29, 0.0  ;;  %477 = vmatprep.subr.bf16.mxu1 %v476_v31 }
  0xe4   :  { %479 = vmatpush3.bf16.msra.mxu1 %v476_v31 }
  0xe5   :  { %450 = vmatprep.subr.mxu1 %v144_v32 }
  0xe8   :  { %451 = vmatpush3.msra.mxu1 %v144_v32 }
  0xe9   :  { %453 = vmatmul.mubr.msk.f32.vlgmr.msra.gmra.mrb[0].mxu1 %vm187_vm2, %v146_v33 }
  0xea   :  { %455 = vmatprep.mubr.msk.f32.mxu1 %vm187_vm2, %v147_v34 }
  0xed   :  { %456 = vmatmul.mubr.msk.f32.gmra.mrb[2].mxu1 %vm187_vm2, %v148_v35 }
  0xee   :  { %458 = vmatprep.mubr.msk.f32.mxu1 %vm187_vm2, %v149_v36 }
  0xf1   :  { %459 = vmatmul.mubr.msk.f32.gmra.mrb[4].mxu1 %vm187_vm2, %v150_v37 }
 0x1bc   :  { %v454_v41 = vpop.f32.mrb[0].mxu1 }
 0x1bd   :  { %v278_v42 = vadd.f32 %v454_v41, %v165_v39  ;;  %v272_v43 = vpop.f32.mrb[1].mxu1 }
 0x1be   :  { %v273_v45 = vadd.f32 %v272_v43, %v160_v40 }
 0x1bf   :  { %v302_v47 = vmax.f32 %v278_v42, 0.0 }
 0x1c0   :  { %v301_v48 = vmax.f32 %v273_v45, 0.0  ;;  %v457_v49 = vpop.f32.mrb[2].mxu1 }
 0x1c1   :  { %v288_v50 = vadd.f32 %v457_v49, %v175_v44  ;;  %v282_v51 = vpop.f32.mrb[3].mxu1 }
 0x1c2   :  { %v481_v52 = vpack.c.bf16 %v302_v47, %v301_v48  ;;  %v283_v53 = vadd.f32 %v282_v51, %v170_v46 }
 0x1c3   :  { %v304_v54 = vmax.f32 %v288_v50, 0.0 }
 0x1c4   :  { %v303_v56 = vmax.f32 %v283_v53, 0.0  ;;  %v460_v57 = vpop.f32.mrb[4].mxu1  ;;  %482 = vmatpush3.bf16.msra.mxu0 %v481_v52 }
 0x1c5   :  { %v298_v59 = vadd.f32 %v460_v57, %v185_v55  ;;  %v292_v60 = vpop.f32.mrb[5].mxu1  ;;  %483 = vmatprep.subr.bf16.mxu0 %v523_v38 }
 0x1c6   :  { %v484_v61 = vpack.c.bf16 %v304_v54, %v303_v56  ;;  %v293_v62 = vadd.f32 %v292_v60, %v180_v58 }
 0x1c7   :  { %v306_v63 = vmax.f32 %v298_v59, 0.0 }
 0x1c8   :  { %v305_v0 = vmax.f32 %v293_v62, 0.0  ;;  %485 = vmatpush3.bf16.msra.mxu0 %v484_v61 }
 0x1c9   :  { %486 = vmatprep.subr.bf16.mxu0 %v523_v38 }
 0x1ca   :  { %v487_v1 = vpack.c.bf16 %v306_v63, %v305_v0 }
 0x1cc   :  { %488 = vmatpush3.bf16.msra.mxu0 %v487_v1 }
 0x1cf   :  { %474 = vmatmul.mubr.msk.f32.vlgmr.msra.gmra.mrb[6].mxu0 %vm314_vm3, %v307_v2 }
 0x2a2   :  { %v384_v4 = vpop.f32.mrb[6].mxu0 }
 0x2a3   :  { %v385_v5 = vadd.f32 %v384_v4, %v312_v3  ;;  %v475_v6 = vpop.f32.mrb[7].mxu0 }
 0x2a5   :  { %389 = vst.msk [vmem:[#allocation2] sm:$0x3] %vm388_vm4, %v385_v5 }
 0x2a6   :  { %507 = shalt.err (!%p504_p4)
}
 0x2a7   :  { %s508_s16 = scalar_lea.hbm %s661_s7, 32 }
 0x2a8   :  { %p509_p5 = scmp.ne.s32.totalorder %s661_s7, %s508_s16  ;;  %p512_p6 = scmp.lt.u32.totalorder %s508_s16, %s661_s7 }
 0x2aa   :  { %p514_p7 = pnand %p512_p6, %p509_p5 }
 0x2ac   :  { %517 = shalt.err (!%p514_p7)
}
 0x2ad   :  { %399 = dma.vmem_to_hbm [thread:$0]  %s397_s14, 32, %s661_s7, [#allocation3]  }
 0x2ae   :  { %518 = dma.done.wait [#allocation3], 32  }
 0x2af   :  { %519 = vsyncadd [#allocation3], 4294967264 }
 0x2b0   :  { %403 = vsyncpa [#allocation3], 1 }

</bundles_post_ra>
